<compile_context>
chip_gen: v7x
topology: tpu7x:2x2x1
jax: 0.10.0
libtpu: 0.0.40
codegen_flags: <defaults>
</compile_context>

<pallas_src>
import jax
import jax.numpy as jnp
import numpy as np
from jax.experimental import pallas as pl
from jax.experimental.pallas import tpu as pltpu


def score_model_kernel(obs_ref, act_ref, w1o_ref, w1a_ref, b1_ref,
                       w2_ref, b2_ref, w3_ref, b3_ref, out_ref):
    rows = obs_ref.shape[0]          # TB * T flattened rows
    TB = out_ref.shape[0]
    T = rows // TB
    H = w2_ref.shape[1]

    # Layer 1: Linear(obs_dim + act_dim -> H) with the concat folded into the
    # split weights:  x @ W1 = obs @ W1[:obs_dim] + act @ W1[obs_dim:].
    # bf16 inputs/weights on the MXU, f32 accumulation, f32 bias/ReLU.
    h = (jnp.dot(obs_ref[...], w1o_ref[...], preferred_element_type=jnp.float32)
         + jnp.dot(act_ref[...], w1a_ref[...], preferred_element_type=jnp.float32)
         + b1_ref[...])
    h = jnp.maximum(h, 0.0)

    # Layer 2: Linear(H -> H) + ReLU, kept fully in f32 (W2 is VMEM-resident
    # and tiny; avoids bf16 VALU paths that v5e lacks).
    h = jnp.dot(h, w2_ref[...], preferred_element_type=jnp.float32) + b2_ref[...]
    h = jnp.maximum(h, 0.0)

    # Layer 3 (H -> 1) fused with the mean over T: w3 is pre-scaled by 1/T, so
    #   mean_t(h_t @ w3 + b3) = (sum_t h_t) . w3_scaled + b3.
    h_sum = jnp.sum(h.reshape(TB, T, H), axis=1)               # (TB, H) seq sum
    y = jnp.sum(h_sum * w3_ref[...], axis=-1, keepdims=True)   # (TB, 1) lane reduce
    out_ref[...] = y + b3_ref[0, 0]


def _round_up(x, m):
    return ((x + m - 1) // m) * m


def _choose_tiling(batch, seq, hidden_dim):
    """Pick a batch tile TB (multiple of 8) from a VMEM budget.

    Caps each live f32 activation buffer (TB*seq, hidden) at ~4 MiB so the
    total per-step footprint (a few activation temporaries + double-buffered
    bf16 input tiles + resident weights) stays well under the 32 MiB scoped
    VMEM limit — safe on v7x's 64 MiB physical VMEM as well as v5e/v6e.
    Returns (TB, num_tiles, padded_batch).
    """
    act_budget_bytes = 4 * 1024 * 1024
    cap_rows = max(8, act_budget_bytes // (hidden_dim * 4))
    cap_tb = max(8, (cap_rows // max(seq, 1)) // 8 * 8)   # batch rows per tile

    b8 = _round_up(batch, 8)                 # minimum padded batch (sublane align)
    if b8 <= cap_tb:
        # Whole padded batch fits one tile; split into two equal tiles when it
        # costs no extra padding so both v7x TensorCores get work.
        tb = b8 // 2 if (b8 >= 16 and b8 % 16 == 0) else b8
    else:
        tb = cap_tb
    num_tiles = -(-batch // tb)              # cdiv over the real batch
    return tb, num_tiles, num_tiles * tb


def score_model_forward(observations, actions, params, timesteps=None, masks=None):
    """observations: (B, T, obs_dim), actions: (B, T, act_dim) -> (B, 1).

    timesteps / masks are accepted for signature parity with ScoreModel.forward
    but are unused (the torch forward ignores them as well).
    """
    del timesteps, masks
    B, T, obs_dim = observations.shape
    act_dim = actions.shape[-1]
    w1, b1, w2, b2, w3, b3 = params
    H = w2.shape[0]

    TB, num_tiles, B_pad = _choose_tiling(B, T, H)

    # Pad the batch to a multiple of the tile, flatten (B,T,D)->(B*T,D) in the
    # wrapper, and cast the streamed inputs to bf16 (dominant HBM traffic).
    def prep(x):
        if B_pad != B:
            x = jnp.pad(x, ((0, B_pad - B), (0, 0), (0, 0)))
        return x.reshape(B_pad * T, x.shape[-1]).astype(jnp.bfloat16)

    obs2d = prep(observations)
    act2d = prep(actions)

    # Split W1 so the (obs, act) concat never hits HBM; bf16 for the MXU.
    w1_obs = w1[:obs_dim].astype(jnp.bfloat16)             # (obs_dim, H)
    w1_act = w1[obs_dim:].astype(jnp.bfloat16)             # (act_dim, H)
    b1_f = b1.reshape(1, H).astype(jnp.float32)
    w2_f = w2.astype(jnp.float32)                           # (H, H)
    b2_f = b2.reshape(1, H).astype(jnp.float32)
    # Fold the mean over T into the last layer's weight.
    w3_scaled = (w3.reshape(1, H) / jnp.float32(T)).astype(jnp.float32)
    b3_smem = b3.reshape(1, 1).astype(jnp.float32)          # scalar in SMEM

    vmem = pl.BlockSpec(memory_space=pltpu.MemorySpace.VMEM)
    smem = pl.BlockSpec(memory_space=pltpu.MemorySpace.SMEM)

    out = pl.pallas_call(
        score_model_kernel,
        out_shape=jax.ShapeDtypeStruct((B_pad, 1), jnp.float32),
        grid=(num_tiles,),
        in_specs=[
            pl.BlockSpec((TB * T, obs_dim), lambda i: (i, 0)),   # observations (bf16)
            pl.BlockSpec((TB * T, act_dim), lambda i: (i, 0)),   # actions (bf16)
            vmem,   # w1_obs  (obs_dim, H) bf16
            vmem,   # w1_act  (act_dim, H) bf16
            vmem,   # b1      (1, H) f32
            vmem,   # w2      (H, H) f32
            vmem,   # b2      (1, H) f32
            vmem,   # w3      (1, H) f32, pre-scaled by 1/T
            smem,   # b3      (1, 1) f32 scalar
        ],
        out_specs=pl.BlockSpec((TB, 1), lambda i: (i, 0)),
        compiler_params=pltpu.CompilerParams(
            dimension_semantics=("parallel",),
            vmem_limit_bytes=32 * 1024 * 1024,
        ),
    )(obs2d, act2d, w1_obs, w1_act, b1_f, w2_f, b2_f, w3_scaled, b3_smem)

    return out[:B]   # drop padded batch rows


def init_params(key, in_dim, hidden_dim):
    """Deterministic synthetic params (torch-Linear-like uniform init)."""
    ks = jax.random.split(key, 6)

    def unif(k, shape, fan_in):
        bound = 1.0 / np.sqrt(fan_in)
        return jax.random.uniform(k, shape, jnp.float32, -bound, bound)

    # Stored as (in_features, out_features); biases as (1, out_features).
    w1 = unif(ks[0], (in_dim, hidden_dim), in_dim)
    b1 = unif(ks[1], (1, hidden_dim), in_dim)
    w2 = unif(ks[2], (hidden_dim, hidden_dim), hidden_dim)
    b2 = unif(ks[3], (1, hidden_dim), hidden_dim)
    w3 = unif(ks[4], (1, hidden_dim), hidden_dim)   # Linear(H, 1) weight as a row
    b3 = unif(ks[5], (1, 1), hidden_dim)
    return (w1, b1, w2, b2, w3, b3)


def reference_forward(observations, actions, params, *, cast_bf16=True):
    """Plain-JAX reference of the torch forward (optionally with the same bf16
    input/W1 rounding the kernel uses, for a tight correctness comparison)."""
    w1, b1, w2, b2, w3, b3 = params
    if cast_bf16:
        observations = observations.astype(jnp.bfloat16).astype(jnp.float32)
        actions = actions.astype(jnp.bfloat16).astype(jnp.float32)
        w1 = w1.astype(jnp.bfloat16).astype(jnp.float32)
    x = jnp.concatenate([observations, actions], axis=-1)
    h = jnp.maximum(x @ w1 + b1, 0.0)
    h = jnp.maximum(h @ w2 + b2, 0.0)
    y = h @ w3.T + b3            # (B, T, 1)
    return jnp.mean(y, axis=1)   # (B, 1)


if __name__ == "__main__":
    def run_case(B, T, obs_dim, act_dim, hidden_dim, seed):
        key = jax.random.PRNGKey(seed)
        k_obs, k_act, k_params = jax.random.split(key, 3)
        observations = jax.random.normal(k_obs, (B, T, obs_dim), jnp.float32)
        actions = jax.random.normal(k_act, (B, T, act_dim), jnp.float32)
        # timesteps / masks are unused by ScoreModel.forward; kept for parity.
        timesteps = jnp.arange(T, dtype=jnp.int32)[None, :].repeat(B, axis=0)
        masks = jnp.ones((B, T), dtype=jnp.int32)
        params = init_params(k_params, obs_dim + act_dim, hidden_dim)

        out = score_model_forward(observations, actions, params, timesteps, masks)
        out = jax.block_until_ready(out)

        ref = reference_forward(observations, actions, params)
        assert out.shape == (B, 1)
        np.testing.assert_allclose(np.asarray(out), np.asarray(ref),
                                   atol=5e-3, rtol=1e-2)

    # Small shapes consistent with the module's forward (batch=2, seq=8, hidden=32).
    run_case(B=2, T=8, obs_dim=11, act_dim=3, hidden_dim=32, seed=0)
    # Exercises a 2-step grid (multi-tile BlockSpec pipeline path).
    run_case(B=32, T=8, obs_dim=11, act_dim=3, hidden_dim=32, seed=1)

    print("KERNEL_OK")
</pallas_src>

<mosaic_0001>
module attributes {stable_mosaic.version = 11 : i64} {
  func.func @score_model_kernel(%arg0: i32, %arg1: memref<64x11xbf16, #tpu.memory_space<vmem>>, %arg2: memref<64x3xbf16, #tpu.memory_space<vmem>>, %arg3: memref<11x32xbf16, #tpu.memory_space<vmem>>, %arg4: memref<3x32xbf16, #tpu.memory_space<vmem>>, %arg5: memref<1x32xf32, #tpu.memory_space<vmem>>, %arg6: memref<32x32xf32, #tpu.memory_space<vmem>>, %arg7: memref<1x32xf32, #tpu.memory_space<vmem>>, %arg8: memref<1x32xf32, #tpu.memory_space<vmem>>, %arg9: memref<1x1xf32, #tpu.memory_space<smem>>, %arg10: memref<8x1xf32, #tpu.memory_space<vmem>>) attributes {dimension_semantics = [#tpu.dimension_semantics<parallel>], iteration_bounds = array<i64: 1>, scalar_prefetch = 0 : i64, scratch_operands = 0 : i64, tpu.core_type = #tpu.core_type<tc>, window_params = [{transform_indices = @transform_0, window_bounds = array<i64: 64, 11>}, {transform_indices = @transform_1, window_bounds = array<i64: 64, 3>}, {pipeline_mode = #tpu.pipeline_mode<synchronous>, transform_indices = @transform_2, window_bounds = array<i64: 11, 32>}, {pipeline_mode = #tpu.pipeline_mode<synchronous>, transform_indices = @transform_3, window_bounds = array<i64: 3, 32>}, {pipeline_mode = #tpu.pipeline_mode<synchronous>, transform_indices = @transform_4, window_bounds = array<i64: 1, 32>}, {pipeline_mode = #tpu.pipeline_mode<synchronous>, transform_indices = @transform_5, window_bounds = array<i64: 32, 32>}, {pipeline_mode = #tpu.pipeline_mode<synchronous>, transform_indices = @transform_6, window_bounds = array<i64: 1, 32>}, {pipeline_mode = #tpu.pipeline_mode<synchronous>, transform_indices = @transform_7, window_bounds = array<i64: 1, 32>}, {transform_indices = @transform_8, window_bounds = array<i64: 1, 1>}, {transform_indices = @transform_9, window_bounds = array<i64: 8, 1>}]} {
    %c0 = arith.constant 0 : index
    %c0_0 = arith.constant 0 : index
    %0 = vector.load %arg1[%c0, %c0_0] : memref<64x11xbf16, #tpu.memory_space<vmem>>, vector<64x11xbf16>
    %c0_1 = arith.constant 0 : index
    %c0_2 = arith.constant 0 : index
    %1 = vector.load %arg3[%c0_1, %c0_2] : memref<11x32xbf16, #tpu.memory_space<vmem>>, vector<11x32xbf16>
    %cst = arith.constant dense<0.000000e+00> : vector<64x32xf32>
    %2 = tpu.matmul %0, %1, %cst {dimension_numbers = #tpu.dot_dimension_numbers<[1], [0], [0], [1], [0, 0, 1, 1], [], []>} : vector<64x11xbf16>, vector<11x32xbf16>, vector<64x32xf32> -> vector<64x32xf32>
    %c0_3 = arith.constant 0 : index
    %c0_4 = arith.constant 0 : index
    %3 = vector.load %arg2[%c0_3, %c0_4] : memref<64x3xbf16, #tpu.memory_space<vmem>>, vector<64x3xbf16>
    %c0_5 = arith.constant 0 : index
    %c0_6 = arith.constant 0 : index
    %4 = vector.load %arg4[%c0_5, %c0_6] : memref<3x32xbf16, #tpu.memory_space<vmem>>, vector<3x32xbf16>
    %cst_7 = arith.constant dense<0.000000e+00> : vector<64x32xf32>
    %5 = tpu.matmul %3, %4, %cst_7 {dimension_numbers = #tpu.dot_dimension_numbers<[1], [0], [0], [1], [0, 0, 1, 1], [], []>} : vector<64x3xbf16>, vector<3x32xbf16>, vector<64x32xf32> -> vector<64x32xf32>
    %6 = arith.addf %2, %5 : vector<64x32xf32>
    %c0_8 = arith.constant 0 : index
    %c0_9 = arith.constant 0 : index
    %7 = vector.load %arg5[%c0_8, %c0_9] : memref<1x32xf32, #tpu.memory_space<vmem>>, vector<1x32xf32>
    %8 = vector.broadcast %7 : vector<1x32xf32> to vector<64x32xf32>
    %9 = arith.addf %6, %8 : vector<64x32xf32>
    %cst_10 = arith.constant 0.000000e+00 : f32
    %10 = vector.broadcast %cst_10 : f32 to vector<64x32xf32>
    %11 = arith.maximumf %9, %10 : vector<64x32xf32>
    %c0_11 = arith.constant 0 : index
    %c0_12 = arith.constant 0 : index
    %12 = vector.load %arg6[%c0_11, %c0_12] : memref<32x32xf32, #tpu.memory_space<vmem>>, vector<32x32xf32>
    %cst_13 = arith.constant dense<0.000000e+00> : vector<64x32xf32>
    %13 = tpu.matmul %11, %12, %cst_13 {dimension_numbers = #tpu.dot_dimension_numbers<[1], [0], [0], [1], [0, 0, 1, 1], [], []>} : vector<64x32xf32>, vector<32x32xf32>, vector<64x32xf32> -> vector<64x32xf32>
    %c0_14 = arith.constant 0 : index
    %c0_15 = arith.constant 0 : index
    %14 = vector.load %arg7[%c0_14, %c0_15] : memref<1x32xf32, #tpu.memory_space<vmem>>, vector<1x32xf32>
    %15 = vector.broadcast %14 : vector<1x32xf32> to vector<64x32xf32>
    %16 = arith.addf %13, %15 : vector<64x32xf32>
    %cst_16 = arith.constant 0.000000e+00 : f32
    %17 = vector.broadcast %cst_16 : f32 to vector<64x32xf32>
    %18 = arith.maximumf %16, %17 : vector<64x32xf32>
    %19 = vector.shape_cast %18 : vector<64x32xf32> to vector<8x8x32xf32>
    %cst_17 = arith.constant dense<0.000000e+00> : vector<8x32xf32>
    %20 = vector.multi_reduction <add>, %19, %cst_17 [1] : vector<8x8x32xf32> to vector<8x32xf32>
    %c0_18 = arith.constant 0 : index
    %c0_19 = arith.constant 0 : index
    %21 = vector.load %arg8[%c0_18, %c0_19] : memref<1x32xf32, #tpu.memory_space<vmem>>, vector<1x32xf32>
    %22 = vector.broadcast %21 : vector<1x32xf32> to vector<8x32xf32>
    %23 = arith.mulf %20, %22 : vector<8x32xf32>
    %cst_20 = arith.constant dense<0.000000e+00> : vector<8xf32>
    %24 = vector.multi_reduction <add>, %23, %cst_20 [1] : vector<8x32xf32> to vector<8xf32>
    %25 = vector.shape_cast %24 : vector<8xf32> to vector<8x1xf32>
    %c0_21 = arith.constant 0 : index
    %c0_22 = arith.constant 0 : index
    %26 = memref.load %arg9[%c0_21, %c0_22] : memref<1x1xf32, #tpu.memory_space<smem>>
    %27 = vector.broadcast %26 : f32 to vector<8x1xf32>
    %28 = arith.addf %25, %27 : vector<8x1xf32>
    %c0_23 = arith.constant 0 : index
    %c0_24 = arith.constant 0 : index
    %29 = vector.load %arg10[%c0_23, %c0_24] : memref<8x1xf32, #tpu.memory_space<vmem>>, vector<8x1xf32>
    tpu.vector_store %arg10[%c0_23, %c0_24], %28 {strides = array<i32>} : memref<8x1xf32, #tpu.memory_space<vmem>>, vector<8x1xf32>,
    return
  }
  func.func @transform_0(%arg0: i32) -> (i32, i32) {
    %c0_i32 = arith.constant 0 : i32
    %c0_i32_0 = arith.constant 0 : i32
    return %arg0, %c0_i32 : i32, i32
  }
  func.func @transform_1(%arg0: i32) -> (i32, i32) {
    %c0_i32 = arith.constant 0 : i32
    %c0_i32_0 = arith.constant 0 : i32
    return %arg0, %c0_i32 : i32, i32
  }
  func.func @transform_2(%arg0: i32) -> (i32, i32) {
    %c0_i32 = arith.constant 0 : i32
    %c0_i32_0 = arith.constant 0 : i32
    %c0_i32_1 = arith.constant 0 : i32
    return %c0_i32, %c0_i32_0 : i32, i32
  }
  func.func @transform_3(%arg0: i32) -> (i32, i32) {
    %c0_i32 = arith.constant 0 : i32
    %c0_i32_0 = arith.constant 0 : i32
    %c0_i32_1 = arith.constant 0 : i32
    return %c0_i32, %c0_i32_0 : i32, i32
  }
  func.func @transform_4(%arg0: i32) -> (i32, i32) {
    %c0_i32 = arith.constant 0 : i32
    %c0_i32_0 = arith.constant 0 : i32
    %c0_i32_1 = arith.constant 0 : i32
    return %c0_i32, %c0_i32_0 : i32, i32
  }
  func.func @transform_5(%arg0: i32) -> (i32, i32) {
    %c0_i32 = arith.constant 0 : i32
    %c0_i32_0 = arith.constant 0 : i32
    %c0_i32_1 = arith.constant 0 : i32
    return %c0_i32, %c0_i32_0 : i32, i32
  }
  func.func @transform_6(%arg0: i32) -> (i32, i32) {
    %c0_i32 = arith.constant 0 : i32
    %c0_i32_0 = arith.constant 0 : i32
    %c0_i32_1 = arith.constant 0 : i32
    return %c0_i32, %c0_i32_0 : i32, i32
  }
  func.func @transform_7(%arg0: i32) -> (i32, i32) {
    %c0_i32 = arith.constant 0 : i32
    %c0_i32_0 = arith.constant 0 : i32
    %c0_i32_1 = arith.constant 0 : i32
    return %c0_i32, %c0_i32_0 : i32, i32
  }
  func.func @transform_8(%arg0: i32) -> (i32, i32) {
    %c0_i32 = arith.constant 0 : i32
    %c0_i32_0 = arith.constant 0 : i32
    %c0_i32_1 = arith.constant 0 : i32
    return %c0_i32, %c0_i32_0 : i32, i32
  }
  func.func @transform_9(%arg0: i32) -> (i32, i32) {
    %c0_i32 = arith.constant 0 : i32
    %c0_i32_0 = arith.constant 0 : i32
    return %arg0, %c0_i32 : i32, i32
  }
}

</mosaic_0001>

<bundles_post_ra>
// kernel: tpu_custom_call.1
= control target key start
LH: loop header
LB: loop body
LE: loop exit
PB: predicated region body
PF: predicated region fallthrough
CT: control target
= control target key end

     0   :  { %vm86_vm0 = vcmask 1040384   ;;  %vm87_vm1 = vcmask 1041408   ;;  %vm73_vm2 = vcmask 23552   ;;  %v671_v1 = vmov 65535   ;;  %s815_s3 = inlined_call_operand.vmem [shape: bf16[3,32], index: 3, kind: input, shape index: {}]   ;;  %s816_s1 = inlined_call_operand.vmem [shape: bf16[64,3], index: 1, kind: input, shape index: {}]   ;;  %s817_s2 = inlined_call_operand.vmem [shape: bf16[11,32], index: 2, kind: input, shape index: {}]   ;;  %s818_s0 = inlined_call_operand.vmem [shape: bf16[64,11], index: 0, kind: input, shape index: {}]   ;;  %s819_s5 = inlined_call_operand.vmem [shape: f32[32,32], index: 5, kind: input, shape index: {}]   ;;  %s820_s4 = inlined_call_operand.vmem [shape: f32[1,32], index: 4, kind: input, shape index: {}]   ;;  %s821_s6 = inlined_call_operand.vmem [shape: f32[1,32], index: 6, kind: input, shape index: {}]   ;;  %s822_s7 = inlined_call_operand.vmem [shape: f32[1,32], index: 7, kind: input, shape index: {}]   ;;  %s823_s8 = inlined_call_operand.<no memory space> [shape: f32[1,1], index: 8, kind: input, shape index: {}]   ;;  %s824_s9 = inlined_call_operand.vmem [shape: f32[8,1], index: 9, kind: output, shape index: {}]  }
   0x1   :  { %v52_v0 = vld [vmem:[%s815_s3] sm:$0x3]  ;;  %v88_v2 = vsel %vm86_vm0, 4294967295, %v671_v1  ;;  %vm196_vm3 = vcmask 1044480   ;;  %vm197_vm4 = vcmask 1045504   ;;  %v663_v7 = vld [vmem:[%s816_s1 + $0x8] sm:$0xff]  }
   0x2   :  { %v662_v3 = vld [vmem:[%s816_s1] sm:$0xff]   ;;  %v89_v4 = vsel %vm87_vm1, %v88_v2, 0  ;;  %v198_v8 = vsel %vm196_vm3, 4294967295, %v671_v1  ;;  %vm183_vm5 = vcmask 89088   ;;  %v667_v11 = vld [vmem:[%s816_s1 + $0x10] sm:$0xff]   ;;  %v668_v13 = vld [vmem:[%s816_s1 + $0x18] sm:$0xff]  }
   0x3   :  { %v91_v5 = vand.u32 %v89_v4, %v52_v0  ;;  %605 = vmatprep.mubr.msk.bf16.mxu0 %vm73_vm2, %v662_v3  ;;  %v664_v6 = vld [vmem:[%s817_s2] sm:$0x3f]   ;;  %v199_v10 = vsel %vm197_vm4, %v198_v8, 0  ;;  %609 = vmatprep.mubr.msk.bf16.mxu1 %vm73_vm2, %v667_v11  ;;  %v666_v14 = vld [vmem:[%s818_s0 + $0x8] sm:$0xff]   ;;  %v669_v15 = vld [vmem:[%s818_s0 + $0x10] sm:$0xff]   ;;  %vm302_vm6 = vcmask 261120  }
   0x4   :  { %v665_v9 = vld [vmem:[%s818_s0] sm:$0xff]   ;;  %v201_v12 = vand.u32 %v664_v6, %v199_v10  ;;  %v670_v16 = vld [vmem:[%s818_s0 + $0x18] sm:$0xff]   ;;  %v292_v18 = vld [vmem:[%s819_s5 + $0x8] sm:$0xff]  ;;  %vm520_vm7 = vcmask 1041409   ;;  %vm523_vm8 = vcmask 1042434   ;;  %vm526_vm9 = vcmask 1043459  }
   0x5   :  { %603 = vmatprep.subr.bf16.mxu0 %v91_v5  ;;  %651 = vmatprep.subr.bf16.mxu1 %v91_v5  ;;  %v291_v17 = vld [vmem:[%s819_s5] sm:$0xff]  ;;  %v293_v20 = vld [vmem:[%s819_s5 + $0x10] sm:$0xff]  ;;  %v294_v21 = vld [vmem:[%s819_s5 + $0x18] sm:$0xff]  ;;  %vm529_vm10 = vcmask 1044484   ;;  %vm532_vm11 = vcmask 1045509   ;;  %vm535_vm12 = vcmask 1046534  }
   0x6   :  { %604 = vmatpush3.bf16.msra.mxu0 %v91_v5  ;;  %652 = vmatpush3.bf16.msra.mxu1 %v91_v5  ;;  %v643_v19 = vpack.c.bf16 %v292_v18, %v291_v17  ;;  %v647_v22 = vpack.c.bf16 %v294_v21, %v293_v20  ;;  %v570_v27 = vld [vmem:[%s820_s4] ss:$0 sm:$0xff]  ;;  %vm538_vm13 = vcmask 1047559   ;;  %vm547_vm14 = vcmask 7168  }
   0x7   :  { %613 = vmatprep.subr.bf16.mxu0 %v201_v12  ;;  %v571_v56 = vld [vmem:[%s821_s6] ss:$0 sm:$0xff] }
   0x8   :  { %644 = vmatprep.subr.bf16.mxu1 %v643_v19 }
   0x9   :  { %606 = vmatmul.mubr.msk.bf16.vlgmr.msra.gmra.mrb[0].mxu0 %vm73_vm2, %v663_v7  ;;  %610 = vmatmul.mubr.msk.bf16.vlgmr.msra.gmra.mrb[0].mxu1 %vm73_vm2, %v668_v13 }
   0xa   :  { %614 = vmatpush3.bf16.msra.mxu0 %v201_v12  ;;  %615 = vmatprep.mubr.msk.bf16.mxu0 %vm183_vm5, %v665_v9 }
   0xb   :  { %646 = vmatpush3.bf16.msra.mxu1 %v643_v19 }
   0xc   :  { %648 = vmatprep.subr.bf16.mxu1 %v647_v22 }
   0xf   :  { %650 = vmatpush3.bf16.msra.mxu1 %v647_v22 }
  0x15   :  { %616 = vmatmul.mubr.msk.bf16.vlgmr.msra.gmra.mrb[0].mxu0 %vm183_vm5, %v666_v14 }
  0x16   :  { %619 = vmatprep.mubr.msk.bf16.mxu0 %vm183_vm5, %v669_v15 }
  0x1d   :  { %620 = vmatmul.mubr.msk.bf16.gmra.mrb[4].mxu0 %vm183_vm5, %v670_v16 }
  0xdc   :  { %v611_v23 = vpop.f32.mrb[0].mxu1 }
  0xdd   :  { %v143_v24 = vpop.f32.mrb[1].mxu1 }
  0xde   :  { %v612_v25 = vpop.f32.mrb[2].mxu1 }
  0xdf   :  { %v146_v26 = vpop.f32.mrb[3].mxu1 }
  0xe8   :  { %v617_v28 = vpop.f32.mrb[0].mxu0 }
  0xe9   :  { %v237_v29 = vpop.f32.mrb[1].mxu0  ;;  %v277_v32 = vadd.f32 %v617_v28, %v570_v27 }
  0xea   :  { %v275_v30 = vadd.f32 %v570_v27, %v237_v29  ;;  %v618_v31 = vpop.f32.mrb[2].mxu0 }
  0xeb   :  { %v240_v33 = vpop.f32.mrb[3].mxu0  ;;  %v278_v36 = vadd.f32 %v618_v31, %v570_v27  ;;  %v285_v38 = vmax.f32 %v277_v32, 0.0 }
  0xec   :  { %v283_v34 = vmax.f32 %v275_v30, 0.0  ;;  %v276_v35 = vadd.f32 %v570_v27, %v240_v33  ;;  %v793_v30 = vld [vmem:[%s822_s7] ss:$0 sm:$0xff] }
  0xed   :  { %v286_v42 = vmax.f32 %v278_v36, 0.0 }
  0xee   :  { %v284_v37 = vmax.f32 %v276_v35, 0.0  ;;  %631 = vmatprep.mubr.msk.f32.mxu1 %vm302_vm6, %v283_v34 }
  0xf0   :  { %v621_v39 = vpop.f32.mrb[4].mxu0  ;;  %632 = vmatmul.mubr.msk.f32.vlgmr.msra.gmra.mrb[4].mxu1 %vm302_vm6, %v284_v37 }
  0xf1   :  { %v262_v40 = vadd.f32 %v621_v39, %v611_v23  ;;  %v253_v41 = vpop.f32.mrb[5].mxu0  ;;  %634 = vmatprep.mubr.msk.f32.mxu1 %vm302_vm6, %v285_v38 }
  0xf2   :  { %v254_v43 = vadd.f32 %v253_v41, %v143_v24  ;;  %v622_v44 = vpop.f32.mrb[6].mxu0 }
  0xf3   :  { %v265_v45 = vadd.f32 %v622_v44, %v612_v25  ;;  %v256_v46 = vpop.f32.mrb[7].mxu0  ;;  %v281_v49 = vadd.f32 %v570_v27, %v262_v40 }
  0xf4   :  { %v279_v47 = vadd.f32 %v570_v27, %v254_v43  ;;  %v257_v48 = vadd.f32 %v256_v46, %v146_v26  ;;  %635 = vmatmul.mubr.msk.f32.gmra.mrb[6].mxu1 %vm302_vm6, %v286_v42 }
  0xf5   :  { %v282_v52 = vadd.f32 %v570_v27, %v265_v45  ;;  %v289_v54 = vmax.f32 %v281_v49, 0.0 }
  0xf6   :  { %v287_v50 = vmax.f32 %v279_v47, 0.0  ;;  %v280_v51 = vadd.f32 %v570_v27, %v257_v48 }
  0xf7   :  { %v290_v55 = vmax.f32 %v282_v52, 0.0 }
  0xf8   :  { %v288_v53 = vmax.f32 %v280_v51, 0.0  ;;  %637 = vmatprep.mubr.msk.f32.mxu1 %vm302_vm6, %v287_v50 }
  0xfa   :  { %638 = vmatmul.mubr.msk.f32.gmra.mrb[8].mxu1 %vm302_vm6, %v288_v53 }
  0xfb   :  { %640 = vmatprep.mubr.msk.f32.mxu1 %vm302_vm6, %v289_v54 }
  0xfe   :  { %641 = vmatmul.mubr.msk.f32.gmra.mrb[10].mxu1 %vm302_vm6, %v290_v55 }
 0x1c3   :  { %v633_v57 = vpop.f32.mrb[4].mxu1 }
 0x1c4   :  { %v399_v58 = vadd.f32 %v633_v57, %v571_v56  ;;  %v393_v59 = vpop.f32.mrb[5].mxu1 }
 0x1c5   :  { %v394_v60 = vadd.f32 %v571_v56, %v393_v59 }
 0x1c6   :  { %v433_v61 = vmax.f32 %v399_v58, 0.0 }
 0x1c7   :  { %v432_v62 = vmax.f32 %v394_v60, 0.0  ;;  %v636_v63 = vpop.f32.mrb[6].mxu1 }
 0x1c8   :  { %v447_v0 = vsel %vm302_vm6, %v433_v61, 0.0  ;;  %v409_v1 = vadd.f32 %v636_v63, %v571_v56  ;;  %v403_v2 = vpop.f32.mrb[7].mxu1 }
 0x1c9   :  { %v448_v3 = vrot.slane %v447_v0, 4  ;;  %v440_v4 = vsel %vm302_vm6, %v432_v62, 0.0  ;;  %v404_v5 = vadd.f32 %v571_v56, %v403_v2 }
 0x1ca   :  { %v441_v6 = vrot.slane %v440_v4, 4  ;;  %v435_v7 = vmax.f32 %v409_v1, 0.0 }
 0x1cb   :  { %v449_v8 = vadd.f32 %v448_v3, %v447_v0  ;;  %v434_v9 = vmax.f32 %v404_v5, 0.0 }
 0x1cc   :  { %v442_v10 = vadd.f32 %v441_v6, %v440_v4  ;;  %v461_v11 = vsel %vm302_vm6, %v435_v7, 0.0 }
 0x1cd   :  { %v450_v12 = vrot.slane %v449_v8, 2  ;;  %v462_v13 = vrot.slane %v461_v11, 4  ;;  %v454_v14 = vsel %vm302_vm6, %v434_v9, 0.0  ;;  %v639_v15 = vpop.f32.mrb[8].mxu1 }
 0x1ce   :  { %v443_v16 = vrot.slane %v442_v10, 2  ;;  %v455_v17 = vrot.slane %v454_v14, 4  ;;  %v419_v18 = vadd.f32 %v639_v15, %v571_v56  ;;  %v413_v19 = vpop.f32.mrb[9].mxu1 }
 0x1cf   :  { %v451_v20 = vadd.f32 %v450_v12, %v449_v8  ;;  %v463_v21 = vadd.f32 %v462_v13, %v461_v11  ;;  %v414_v22 = vadd.f32 %v571_v56, %v413_v19 }
 0x1d0   :  { %v444_v23 = vadd.f32 %v443_v16, %v442_v10  ;;  %v456_v24 = vadd.f32 %v455_v17, %v454_v14  ;;  %v437_v25 = vmax.f32 %v419_v18, 0.0 }
 0x1d1   :  { %v452_v26 = vrot.slane %v451_v20, 1  ;;  %v464_v27 = vrot.slane %v463_v21, 2  ;;  %v436_v28 = vmax.f32 %v414_v22, 0.0  ;;  %v642_v29 = vpop.f32.mrb[10].mxu1 }
 0x1d2   :  { %v445_v31 = vrot.slane %v444_v23, 1  ;;  %v457_v32 = vrot.slane %v456_v24, 2  ;;  %v475_v33 = vsel %vm302_vm6, %v437_v25, 0.0  ;;  %v429_v34 = vadd.f32 %v642_v29, %v571_v56  ;;  %v423_v35 = vpop.f32.mrb[11].mxu1 }
 0x1d3   :  { %v453_v36 = vadd.f32 %v452_v26, %v451_v20  ;;  %v465_v37 = vadd.f32 %v464_v27, %v463_v21  ;;  %v476_v38 = vrot.slane %v475_v33, 4  ;;  %v468_v39 = vsel %vm302_vm6, %v436_v28, 0.0 }
 0x1d4   :  { %v446_v40 = vadd.f32 %v445_v31, %v444_v23  ;;  %v458_v41 = vadd.f32 %v457_v32, %v456_v24  ;;  %v469_v42 = vrot.slane %v468_v39, 4  ;;  %v439_v43 = vmax.f32 %v429_v34, 0.0 }
 0x1d5   :  { %v504_v44 = vmul.f32 %v793_v30, %v453_v36  ;;  %v466_v45 = vrot.slane %v465_v37, 1  ;;  %v477_v46 = vadd.f32 %v476_v38, %v475_v33  ;;  %v424_v47 = vadd.f32 %v571_v56, %v423_v35 }
 0x1d6   :  { %v503_v48 = vmul.f32 %v793_v30, %v446_v40  ;;  %v459_v49 = vrot.slane %v458_v41, 1  ;;  %v470_v50 = vadd.f32 %v469_v42, %v468_v39  ;;  %v489_v51 = vsel %vm302_vm6, %v439_v43, 0.0 }
 0x1d7   :  { %v519_v52 = vrot.slane %v504_v44, 7  ;;  %v467_v53 = vadd.f32 %v466_v45, %v465_v37  ;;  %v478_v54 = vrot.slane %v477_v46, 2  ;;  %v490_v55 = vrot.slane %v489_v51, 4 }
 0x1d8   :  { %v460_v57 = vadd.f32 %v459_v49, %v458_v41  ;;  %v471_v58 = vrot.slane %v470_v50, 2  ;;  %v438_v59 = vmax.f32 %v424_v47, 0.0  ;;  %v545_v34 = vstv %s823_s8 }
 0x1d9   :  { %v506_v60 = vmul.f32 %v793_v30, %v467_v53  ;;  %v479_v61 = vadd.f32 %v478_v54, %v477_v46  ;;  %v491_v62 = vadd.f32 %v490_v55, %v489_v51  ;;  %v521_v63 = vsel %vm520_vm7, %v519_v52, %v503_v48 }
 0x1da   :  { %v505_v56 = vmul.f32 %v793_v30, %v460_v57  ;;  %v472_v0 = vadd.f32 %v471_v58, %v470_v50  ;;  %v482_v1 = vsel %vm302_vm6, %v438_v59, 0.0 }
 0x1db   :  { %v480_v2 = vrot.slane %v479_v61, 1  ;;  %v492_v3 = vrot.slane %v491_v62, 2  ;;  %v483_v4 = vrot.slane %v482_v1, 4  ;;  %v525_v7 = vrot.slane %v506_v60, 5 }
 0x1dc   :  { %v522_v5 = vrot.slane %v505_v56, 6  ;;  %v473_v6 = vrot.slane %v472_v0, 1 }
 0x1dd   :  { %v481_v8 = vadd.f32 %v480_v2, %v479_v61  ;;  %v493_v9 = vadd.f32 %v492_v3, %v491_v62  ;;  %v484_v10 = vadd.f32 %v483_v4, %v482_v1 }
 0x1de   :  { %v474_v11 = vadd.f32 %v473_v6, %v472_v0  ;;  %v524_v12 = vsel %vm523_vm8, %v522_v5, %v521_v63 }
 0x1df   :  { %v508_v13 = vmul.f32 %v793_v30, %v481_v8  ;;  %v494_v14 = vrot.slane %v493_v9, 1  ;;  %v485_v15 = vrot.slane %v484_v10, 2  ;;  %v527_v16 = vsel %vm526_vm9, %v525_v7, %v524_v12 }
 0x1e0   :  { %v507_v17 = vmul.f32 %v793_v30, %v474_v11 }
 0x1e1   :  { %v486_v18 = vadd.f32 %v485_v15, %v484_v10  ;;  %v495_v20 = vadd.f32 %v494_v14, %v493_v9  ;;  %v531_v22 = vrot.slane %v508_v13, 3 }
 0x1e2   :  { %v528_v19 = vrot.slane %v507_v17, 4 }
 0x1e3   :  { %v487_v21 = vrot.slane %v486_v18, 1  ;;  %v510_v26 = vmul.f32 %v793_v30, %v495_v20 }
 0x1e4   :  { %v530_v23 = vsel %vm529_vm10, %v528_v19, %v527_v16 }
 0x1e5   :  { %v488_v24 = vadd.f32 %v487_v21, %v486_v18  ;;  %v533_v25 = vsel %vm532_vm11, %v531_v22, %v530_v23  ;;  %v537_v29 = vrot.slane %v510_v26, 1 }
 0x1e7   :  { %v509_v27 = vmul.f32 %v793_v30, %v488_v24 }
 0x1e9   :  { %v534_v28 = vrot.slane %v509_v27, 2 }
 0x1eb   :  { %v536_v31 = vsel %vm535_vm12, %v534_v28, %v533_v25 }
 0x1ec   :  { %v539_v32 = vsel %vm538_vm13, %v537_v29, %v536_v31 }
 0x1ed   :  { %v541_v33 = vsel %vm302_vm6, %v539_v32, 0.0 }
 0x1ee   :  { %542 = vadd.xlane.f32.xlu0 %v541_v33 }
 0x27b   :  { %v543_v35 = vpop.xlane.xlu0 %542 }
 0x27c   :  { %v546_v36 = vadd.f32 %v545_v34, %v543_v35 }
 0x27e   :  { %548 = vst.msk [vmem:[%s824_s9] sm:$0xff] %vm547_vm14, %v546_v36 }

</bundles_post_ra>
